<compile_context>
chip_gen: v7x
topology: tpu7x:2x2x1
jax: 0.10.0
libtpu: 0.0.40
codegen_flags: <defaults>
</compile_context>

<pallas_src>
import functools

import jax
import jax.numpy as jnp
from jax import lax
from jax.experimental import pallas as pl
from jax.experimental.pallas import tpu as pltpu


def _round_up(v, m):
    return (v + m - 1) // m * m


def _min_sublane(dtype):
    size = jnp.dtype(dtype).itemsize
    if size >= 4:
        return 8
    if size == 2:
        return 16
    return 32


def _chip_vmem_bytes():
    """Per-core VMEM capacity; conservative fallback if the query is unavailable."""
    try:
        cap = int(getattr(pltpu.get_tpu_info(), "vmem_capacity_bytes", 0))
        if cap > 0:
            return cap
    except Exception:
        pass
    return 64 << 20  # v7x per-TC size: safe lower bound across generations


def _pick_k_tile(in_f, max_k_tile):
    """Largest 128-aligned divisor of in_f that is <= max_k_tile, else full in_f."""
    for tk in (1024, 512, 384, 256, 128):
        if tk <= max_k_tile and in_f % tk == 0:
            return tk
    return in_f  # odd in_features: keep the K axis untiled (still correct)


# --------------------------------------------------------------------------------------
# Kernels
# --------------------------------------------------------------------------------------
def _layernorm_epilogue(y, p_ref, *, eps, out_f, needs_mask):
    gamma = p_ref[1:2, :]
    beta = p_ref[2:3, :]
    inv_n = 1.0 / out_f
    if needs_mask:
        mask = p_ref[3:4, :]  # precomputed 1.0 / 0.0 lane-validity row (VMEM resident)
        mean = jnp.sum(y * mask, axis=-1, keepdims=True) * inv_n
        diff = y - mean
        var = jnp.sum(diff * diff * mask, axis=-1, keepdims=True) * inv_n
    else:
        mean = jnp.sum(y, axis=-1, keepdims=True) * inv_n
        diff = y - mean
        var = jnp.sum(diff * diff, axis=-1, keepdims=True) * inv_n
    # PyTorch nn.LayerNorm: biased variance, eps inside the sqrt.
    return diff * lax.rsqrt(var + eps) * gamma + beta


def _fused_kernel(x_ref, w_ref, p_ref, o_ref, *, apply_norm, eps, out_f, needs_mask):
    # Single K step: no scratch accumulator, one pass.
    # x_ref: (tm, in_f)  native dtype
    # w_ref: (in_f, out_pad) native dtype, VMEM-resident (constant block index)
    # p_ref: (4, out_pad) f32: [bias; gamma; beta; lane_mask]
    y = jnp.dot(x_ref[...], w_ref[...], preferred_element_type=jnp.float32)
    y = y + p_ref[0:1, :]
    if apply_norm:
        y = _layernorm_epilogue(y, p_ref, eps=eps, out_f=out_f, needs_mask=needs_mask)
    o_ref[...] = y.astype(o_ref.dtype)


def _ktiled_kernel(x_ref, w_ref, p_ref, o_ref, acc_ref, *,
                   apply_norm, eps, out_f, needs_mask):
    # K-tiled reduction with f32 VMEM accumulator (weight too large for VMEM residency).
    k = pl.program_id(1)

    @pl.when(k == 0)
    def _():
        acc_ref[...] = jnp.zeros_like(acc_ref)

    acc_ref[...] += jnp.dot(x_ref[...], w_ref[...],
                            preferred_element_type=jnp.float32)

    @pl.when(k == pl.num_programs(1) - 1)
    def _():
        y = acc_ref[...] + p_ref[0:1, :]
        if apply_norm:
            y = _layernorm_epilogue(y, p_ref, eps=eps, out_f=out_f,
                                    needs_mask=needs_mask)
        o_ref[...] = y.astype(o_ref.dtype)


# --------------------------------------------------------------------------------------
# Parameter prep (do once per model, not per call)
# --------------------------------------------------------------------------------------
def prepare_params(weight, bias, gamma=None, beta=None):
    """weight: [out_features, in_features]; bias/gamma/beta: [out_features].
    Returns (w_t, params, out_features):
        w_t:    [in_features, out_pad]  transposed + lane-padded weight
        params: [4, out_pad] f32        rows = bias, gamma, beta, lane mask
    """
    out_f, in_f = weight.shape
    out_pad = _round_up(out_f, 128)
    w_t = jnp.zeros((in_f, out_pad), weight.dtype).at[:, :out_f].set(weight.T)
    g = jnp.ones((out_f,), jnp.float32) if gamma is None else gamma.astype(jnp.float32)
    b = jnp.zeros((out_f,), jnp.float32) if beta is None else beta.astype(jnp.float32)
    params = jnp.zeros((4, out_pad), jnp.float32)
    params = params.at[0, :out_f].set(bias.astype(jnp.float32))
    params = params.at[1, :out_f].set(g)
    params = params.at[2, :out_f].set(b)
    params = params.at[3, :out_f].set(1.0)  # lane-validity mask
    return w_t, params, out_f


# --------------------------------------------------------------------------------------
# Wrapper
# --------------------------------------------------------------------------------------
def embedding_layer(x, w_t, params, out_features, *, model_type="linear",
                    norm_layer=True, eps=1e-5, tm=None, max_k_tile=1024,
                    force_k_grid=False, core_parallel_rows=False):
    """Pallas equivalent of EmbeddingLayer.forward.

    x:      [B, S, in_features]
    w_t:    [in_features, out_pad]   (from prepare_params)
    params: [4, out_pad] f32         (from prepare_params)
    returns [B, S, out_features]
    """
    if model_type not in ("linear", "conv1d"):
        raise KeyError(f"Model type: {model_type} is not implemented")

    B, S, in_f = x.shape
    assert w_t.shape[0] == in_f
    out_pad = w_t.shape[1]
    needs_mask = out_pad != out_features
    M = B * S
    x2d = x.reshape(M, in_f)  # metadata-only reshape, no HBM copy

    xb = jnp.dtype(x.dtype).itemsize
    wb = jnp.dtype(w_t.dtype).itemsize
    ob = xb
    sub = _min_sublane(x.dtype)

    chip_vmem = _chip_vmem_bytes()
    budget = max(24 << 20, chip_vmem - (12 << 20))  # headroom for Mosaic scratch
    params_bytes = 2 * 4 * out_pad * 4

    # ---- K tiling / weight residency -------------------------------------------------
    w_full_bytes = 2 * in_f * out_pad * wb  # double-buffered allocation
    resident = (not force_k_grid) and (w_full_bytes <= budget // 2)
    if resident:
        tk, num_k = in_f, 1
    else:
        tk = _pick_k_tile(in_f, max_k_tile)
        while tk > 128 and in_f % (tk // 2) == 0 and 2 * tk * out_pad * wb > budget // 2:
            tk //= 2
        num_k = in_f // tk if in_f % tk == 0 else 1
        if num_k == 1:
            tk = in_f
    use_acc = num_k > 1

    def tile_bytes(tm_):
        b = (2 * tm_ * tk * xb            # x tiles (double buffered)
             + 2 * tk * out_pad * wb      # weight tiles
             + 2 * tm_ * out_pad * ob     # output tiles
             + params_bytes)
        if use_acc:
            b += tm_ * out_pad * 4        # f32 accumulator scratch
        return b

    # ---- row tiling ------------------------------------------------------------------
    tm_desired = tm if tm is not None else (1024 if out_pad <= 256 else 512)
    tm_eff = max(sub, min(_round_up(tm_desired, sub), _round_up(M, sub)))
    while tm_eff > sub and tile_bytes(tm_eff) > budget:
        tm_eff = max(sub, _round_up(tm_eff // 2, sub))
    num_m = pl.cdiv(M, tm_eff)

    vmem_limit = int(min(chip_vmem - (4 << 20),
                         max(32 << 20, tile_bytes(tm_eff) + (4 << 20))))

    # TODO(synk): on v7x, sweep core_parallel_rows=True (pltpu.CORE_PARALLEL) to split
    # row tiles across both TensorCores; default is plain PARALLEL for portability.
    row_sem = pltpu.CORE_PARALLEL if core_parallel_rows else pltpu.PARALLEL

    if not use_acc:
        kernel = functools.partial(_fused_kernel, apply_norm=norm_layer, eps=eps,
                                   out_f=out_features, needs_mask=needs_mask)
        grid_spec = pltpu.PrefetchScalarGridSpec(
            num_scalar_prefetch=0,
            grid=(num_m,),
            in_specs=[
                pl.BlockSpec((tm_eff, in_f), lambda i: (i, 0)),
                pl.BlockSpec((in_f, out_pad), lambda i: (0, 0)),   # resident weight
                pl.BlockSpec((4, out_pad), lambda i: (0, 0)),      # resident params
            ],
            out_specs=pl.BlockSpec((tm_eff, out_pad), lambda i: (i, 0)),
        )
        dims = (row_sem,)
    else:
        kernel = functools.partial(_ktiled_kernel, apply_norm=norm_layer, eps=eps,
                                   out_f=out_features, needs_mask=needs_mask)
        grid_spec = pltpu.PrefetchScalarGridSpec(
            num_scalar_prefetch=0,
            grid=(num_m, num_k),
            in_specs=[
                pl.BlockSpec((tm_eff, tk), lambda i, k: (i, k)),
                pl.BlockSpec((tk, out_pad), lambda i, k: (k, 0)),
                pl.BlockSpec((4, out_pad), lambda i, k: (0, 0)),
            ],
            out_specs=pl.BlockSpec((tm_eff, out_pad), lambda i, k: (i, 0)),
            scratch_shapes=[pltpu.VMEM((tm_eff, out_pad), jnp.float32)],
        )
        dims = (row_sem, pltpu.ARBITRARY)

    out2d = pl.pallas_call(
        kernel,
        out_shape=jax.ShapeDtypeStruct((M, out_pad), x.dtype),
        grid_spec=grid_spec,
        compiler_params=pltpu.CompilerParams(
            dimension_semantics=dims, vmem_limit_bytes=vmem_limit),
    )(x2d, w_t, params)

    if out_pad != out_features:
        out2d = out2d[:, :out_features]  # lane trim only; rows are never padded
    return out2d.reshape(B, S, out_features)


# --------------------------------------------------------------------------------------
# Reference + tests
# --------------------------------------------------------------------------------------
def _reference(x, weight, bias, gamma, beta, norm_layer, eps=1e-5):
    y = jnp.einsum("bsi,oi->bso", x, weight) + bias
    if norm_layer:
        mean = jnp.mean(y, axis=-1, keepdims=True)
        var = jnp.mean((y - mean) ** 2, axis=-1, keepdims=True)
        y = (y - mean) / jnp.sqrt(var + eps)
        y = y * gamma + beta
    return y


def _make_params(key, in_features, out_features):
    kw, kb = jax.random.split(key)
    bound = 1.0 / (in_features ** 0.5)
    weight = jax.random.uniform(kw, (out_features, in_features),
                                minval=-bound, maxval=bound, dtype=jnp.float32)
    bias = jax.random.uniform(kb, (out_features,),
                              minval=-bound, maxval=bound, dtype=jnp.float32)
    gamma = jnp.ones((out_features,), dtype=jnp.float32)
    beta = jnp.zeros((out_features,), dtype=jnp.float32)
    return weight, bias, gamma, beta


if __name__ == "__main__":
    key = jax.random.PRNGKey(0)
    k1, k2, k3, k4 = jax.random.split(key, 4)

    # Case 1: module-sized shapes, out_features < 128 (lane padding + masked LayerNorm
    # stats), fused 1-D grid with VMEM-resident weight. 'linear' path with LayerNorm.
    B, S, in_features, out_features = 2, 8, 32, 64
    x = jax.random.normal(k1, (B, S, in_features), dtype=jnp.float32)
    weight, bias, gamma, beta = _make_params(k2, in_features, out_features)
    w_t, params, out_f = prepare_params(weight, bias, gamma, beta)

    out = embedding_layer(x, w_t, params, out_f,
                          model_type="linear", norm_layer=True)
    jax.block_until_ready(out)
    ref = _reference(x, weight, bias, gamma, beta, norm_layer=True)
    assert out.shape == (B, S, out_features)
    assert jnp.allclose(out, ref, atol=1e-5, rtol=1e-5)

    # 'conv1d' path (kernel_size=1) without LayerNorm — identical math, same kernel.
    out2 = embedding_layer(x, w_t, params, out_f,
                           model_type="conv1d", norm_layer=False)
    jax.block_until_ready(out2)
    ref2 = _reference(x, weight, bias, gamma, beta, norm_layer=False)
    assert jnp.allclose(out2, ref2, atol=1e-5, rtol=1e-5)

    # Case 2: M not divisible by the row tile (partial last block, masked final stores)
    # and multiple row steps over the resident weight (tm=8 -> 4 row blocks for M=30).
    B3, S3 = 3, 10
    x3 = jax.random.normal(k3, (B3, S3, in_features), dtype=jnp.float32)
    out3 = embedding_layer(x3, w_t, params, out_f,
                           model_type="linear", norm_layer=True, tm=8)
    jax.block_until_ready(out3)
    ref3 = _reference(x3, weight, bias, gamma, beta, norm_layer=True)
    assert out3.shape == (B3, S3, out_features)
    assert jnp.allclose(out3, ref3, atol=1e-5, rtol=1e-5)

    # Case 3: force the K-tiled accumulator path (weight streamed in 128-wide K tiles).
    B2, S2, in2, out2f = 2, 64, 256, 128
    x4 = jax.random.normal(k4, (B2, S2, in2), dtype=jnp.float32)
    weight2, bias2, gamma2, beta2 = _make_params(k2, in2, out2f)
    w_t2, params2, out_f2 = prepare_params(weight2, bias2, gamma2, beta2)
    out4 = embedding_layer(x4, w_t2, params2, out_f2,
                           model_type="linear", norm_layer=True,
                           max_k_tile=128, force_k_grid=True)
    jax.block_until_ready(out4)
    ref4 = _reference(x4, weight2, bias2, gamma2, beta2, norm_layer=True)
    assert jnp.allclose(out4, ref4, atol=1e-4, rtol=1e-4)

    print("KERNEL_OK")
</pallas_src>

<mosaic_0001>
module attributes {stable_mosaic.version = 11 : i64} {
  func.func @_fused_kernel(%arg0: i32, %arg1: memref<16x32xf32, #tpu.memory_space<vmem>>, %arg2: memref<32x128xf32, #tpu.memory_space<vmem>>, %arg3: memref<4x128xf32, #tpu.memory_space<vmem>>, %arg4: memref<16x128xf32, #tpu.memory_space<vmem>>) attributes {dimension_semantics = [#tpu.dimension_semantics<parallel>], iteration_bounds = array<i64: 1>, scalar_prefetch = 0 : i64, scratch_operands = 0 : i64, tpu.core_type = #tpu.core_type<tc>, window_params = [{transform_indices = @transform_0, window_bounds = array<i64: 16, 32>}, {pipeline_mode = #tpu.pipeline_mode<synchronous>, transform_indices = @transform_1, window_bounds = array<i64: 32, 128>}, {pipeline_mode = #tpu.pipeline_mode<synchronous>, transform_indices = @transform_2, window_bounds = array<i64: 4, 128>}, {transform_indices = @transform_3, window_bounds = array<i64: 16, 128>}]} {
    %c0 = arith.constant 0 : index
    %c0_0 = arith.constant 0 : index
    %0 = vector.load %arg1[%c0, %c0_0] : memref<16x32xf32, #tpu.memory_space<vmem>>, vector<16x32xf32>
    %c0_1 = arith.constant 0 : index
    %c0_2 = arith.constant 0 : index
    %1 = vector.load %arg2[%c0_1, %c0_2] : memref<32x128xf32, #tpu.memory_space<vmem>>, vector<32x128xf32>
    %cst = arith.constant dense<0.000000e+00> : vector<16x128xf32>
    %2 = tpu.matmul %0, %1, %cst {dimension_numbers = #tpu.dot_dimension_numbers<[1], [0], [0], [1], [0, 0, 1, 1], [], []>} : vector<16x32xf32>, vector<32x128xf32>, vector<16x128xf32> -> vector<16x128xf32>
    %c0_3 = arith.constant 0 : index
    %c0_4 = arith.constant 0 : index
    %3 = vector.load %arg3[%c0_3, %c0_4] : memref<4x128xf32, #tpu.memory_space<vmem>>, vector<1x128xf32>
    %4 = vector.broadcast %3 : vector<1x128xf32> to vector<16x128xf32>
    %5 = arith.addf %2, %4 : vector<16x128xf32>
    %c1 = arith.constant 1 : index
    %c0_5 = arith.constant 0 : index
    %6 = vector.load %arg3[%c1, %c0_5] : memref<4x128xf32, #tpu.memory_space<vmem>>, vector<1x128xf32>
    %c2 = arith.constant 2 : index
    %c0_6 = arith.constant 0 : index
    %7 = vector.load %arg3[%c2, %c0_6] : memref<4x128xf32, #tpu.memory_space<vmem>>, vector<1x128xf32>
    %c3 = arith.constant 3 : index
    %c0_7 = arith.constant 0 : index
    %8 = vector.load %arg3[%c3, %c0_7] : memref<4x128xf32, #tpu.memory_space<vmem>>, vector<1x128xf32>
    %9 = vector.broadcast %8 : vector<1x128xf32> to vector<16x128xf32>
    %10 = arith.mulf %5, %9 : vector<16x128xf32>
    %cst_8 = arith.constant dense<0.000000e+00> : vector<16xf32>
    %11 = vector.multi_reduction <add>, %10, %cst_8 [1] : vector<16x128xf32> to vector<16xf32>
    %12 = vector.shape_cast %11 : vector<16xf32> to vector<16x1xf32>
    %cst_9 = arith.constant 1.562500e-02 : f32
    %13 = vector.broadcast %cst_9 : f32 to vector<16x1xf32>
    %14 = arith.mulf %12, %13 : vector<16x1xf32>
    %15 = vector.broadcast %14 : vector<16x1xf32> to vector<16x128xf32>
    %16 = arith.subf %5, %15 : vector<16x128xf32>
    %17 = arith.mulf %16, %16 : vector<16x128xf32>
    %18 = vector.broadcast %8 : vector<1x128xf32> to vector<16x128xf32>
    %19 = arith.mulf %17, %18 : vector<16x128xf32>
    %cst_10 = arith.constant dense<0.000000e+00> : vector<16xf32>
    %20 = vector.multi_reduction <add>, %19, %cst_10 [1] : vector<16x128xf32> to vector<16xf32>
    %21 = vector.shape_cast %20 : vector<16xf32> to vector<16x1xf32>
    %cst_11 = arith.constant 1.562500e-02 : f32
    %22 = vector.broadcast %cst_11 : f32 to vector<16x1xf32>
    %23 = arith.mulf %21, %22 : vector<16x1xf32>
    %cst_12 = arith.constant 9.99999974E-6 : f32
    %24 = vector.broadcast %cst_12 : f32 to vector<16x1xf32>
    %25 = arith.addf %23, %24 : vector<16x1xf32>
    %26 = math.rsqrt %25 : vector<16x1xf32>
    %27 = vector.broadcast %26 : vector<16x1xf32> to vector<16x128xf32>
    %28 = arith.mulf %16, %27 : vector<16x128xf32>
    %29 = vector.broadcast %6 : vector<1x128xf32> to vector<16x128xf32>
    %30 = arith.mulf %28, %29 : vector<16x128xf32>
    %31 = vector.broadcast %7 : vector<1x128xf32> to vector<16x128xf32>
    %32 = arith.addf %30, %31 : vector<16x128xf32>
    %c0_13 = arith.constant 0 : index
    %c0_14 = arith.constant 0 : index
    %33 = vector.load %arg4[%c0_13, %c0_14] : memref<16x128xf32, #tpu.memory_space<vmem>>, vector<16x128xf32>
    tpu.vector_store %arg4[%c0_13, %c0_14], %32 {strides = array<i32>} : memref<16x128xf32, #tpu.memory_space<vmem>>, vector<16x128xf32>,
    return
  }
  func.func @transform_0(%arg0: i32) -> (i32, i32) {
    %c0_i32 = arith.constant 0 : i32
    %c0_i32_0 = arith.constant 0 : i32
    return %arg0, %c0_i32 : i32, i32
  }
  func.func @transform_1(%arg0: i32) -> (i32, i32) {
    %c0_i32 = arith.constant 0 : i32
    %c0_i32_0 = arith.constant 0 : i32
    %c0_i32_1 = arith.constant 0 : i32
    return %c0_i32, %c0_i32_0 : i32, i32
  }
  func.func @transform_2(%arg0: i32) -> (i32, i32) {
    %c0_i32 = arith.constant 0 : i32
    %c0_i32_0 = arith.constant 0 : i32
    %c0_i32_1 = arith.constant 0 : i32
    return %c0_i32, %c0_i32_0 : i32, i32
  }
  func.func @transform_3(%arg0: i32) -> (i32, i32) {
    %c0_i32 = arith.constant 0 : i32
    %c0_i32_0 = arith.constant 0 : i32
    return %arg0, %c0_i32 : i32, i32
  }
}

</mosaic_0001>

<bundles_post_ra>
// kernel: tpu_custom_call.1
= control target key start
LH: loop header
LB: loop body
LE: loop exit
PB: predicated region body
PF: predicated region fallthrough
CT: control target
= control target key end

     0   :  { %8 = vsyncpa [#allocation3], 0  ;;  %s395_s0 = inlined_call_operand.hbm [shape: f32[16,32], index: 0, kind: input, shape index: {}]   ;;  %s396_s1 = inlined_call_operand.hbm [shape: f32[32,128], index: 1, kind: input, shape index: {}]   ;;  %s397_s2 = inlined_call_operand.vmem [shape: f32[4,128], index: 2, kind: input, shape index: {}]   ;;  %s398_s3 = inlined_call_operand.hbm [shape: f32[16,128], index: 3, kind: output, shape index: {}]  }
   0x1   :  { %9 = vsyncpa [#allocation6], 0 }
   0x2   :  { %10 = vsyncpa [#allocation4], 0  ;;  %s313_s12 = smov [#allocation2]   ;;  %s241_s16 = scalar_lea.hbm %s395_s0, 256 }
   0x3   :  { %s16_s13 = sshll.u32 %s313_s12, 4  ;;  %p242_p0 = scmp.ne.s32.totalorder %s395_s0, %s241_s16  ;;  %s17_s13 = int_to_ptr.vmem [resolvable:$true] %s16_s13 }
   0x4   :  { %p245_p1 = scmp.lt.u32.totalorder %s241_s16, %s395_s0 }
   0x6   :  { %p247_p2 = pnand %p245_p1, %p242_p0 }
   0x8   :  { %250 = shalt.err (!%p247_p2)
}
   0x9   :  { %s251_s21 = scalar_lea.vmem %s17_s13, 256  ;;  %p256_p4 = scmp.lt.s32.totalorder %s17_s13, %s17_s13 }
   0xa   :  { %p252_p3 = scmp.ne.s32.totalorder %s17_s13, %s251_s21  ;;  %p257_p5 = scmp.lt.s32.totalorder %s251_s21, %s251_s21 }
   0xc   :  { %p258_p6 = por %p257_p5, %p256_p4 }
   0xe   :  { %p259_p7 = pnand %p258_p6, %p252_p3 }
  0x10   :  { %262 = shalt.err (!%p259_p7)
}
  0x11   :  { %s314_s22 = smov 128   ;;  %s315_s23 = smov 8  }
  0x12   :  { %22 = dma.hbm_to_vmem [thread:$0]  %s395_s0, 256, %s17_s13, [#allocation3], %s314_s22, %s314_s22, %s315_s23  }
  0x13   :  { %s316_s26 = smov [#allocation5]   ;;  %s263_s30 = scalar_lea.hbm %s396_s1, 512 }
  0x14   :  { %s28_s27 = sshll.u32 %s316_s26, 4  ;;  %p264_p8 = scmp.ne.s32.totalorder %s396_s1, %s263_s30  ;;  %s29_s27 = int_to_ptr.vmem [resolvable:$true] %s28_s27 }
  0x15   :  { %p267_p9 = scmp.lt.u32.totalorder %s263_s30, %s396_s1 }
  0x17   :  { %p269_p10 = pnand %p267_p9, %p264_p8 }
  0x19   :  { %272 = shalt.err (!%p269_p10)
}
  0x1a   :  { %s273_s8 = scalar_lea.vmem %s29_s27, 512  ;;  %p278_p12 = scmp.lt.s32.totalorder %s29_s27, %s29_s27 }
  0x1b   :  { %p274_p11 = scmp.ne.s32.totalorder %s29_s27, %s273_s8  ;;  %p279_p13 = scmp.lt.s32.totalorder %s273_s8, %s273_s8 }
  0x1d   :  { %p280_p0 = por %p279_p13, %p278_p12 }
  0x1f   :  { %p281_p1 = pnand %p280_p0, %p274_p11 }
  0x21   :  { %284 = shalt.err (!%p281_p1)
}
  0x22   :  { %34 = dma.hbm_to_vmem [thread:$0]  %s396_s1, 512, %s29_s27, [#allocation6], %s314_s22, %s314_s22, %s315_s23  }
  0x23   :  { %307 = dma.done.wait [#allocation3], 256  }
  0x24   :  { %308 = vsyncadd [#allocation3], 4294967040 }
  0x25   :  { %309 = dma.done.wait [#allocation6], 512  }
  0x26   :  { %310 = vsyncadd [#allocation6], 4294966784  ;;  %vm54_vm0 = vcmask 261120   ;;  %v45_v0 = vld [vmem:[#allocation5] sm:$0xff]  ;;  %v46_v1 = vld [vmem:[#allocation5 + $0x8] sm:$0xff]  ;;  %s317_s17 = smov [#allocation7]  }
  0x27   :  { %v47_v2 = vld [vmem:[#allocation5 + $0x10] sm:$0xff]  ;;  %v224_v3 = vpack.c.bf16 %v46_v1, %v45_v0  ;;  %v48_v4 = vld [vmem:[#allocation5 + $0x18] sm:$0xff]  ;;  %s188_s18 = sshll.u32 %s317_s17, 4  ;;  %s189_s18 = int_to_ptr.vmem [resolvable:$true] %s188_s18 }
  0x28   :  { %v43_v5 = vld [vmem:[#allocation2] sm:$0xff]  ;;  %v228_v6 = vpack.c.bf16 %v48_v4, %v47_v2  ;;  %v44_v7 = vld [vmem:[#allocation2 + $0x8] sm:$0xff]  ;;  %s285_s19 = scalar_lea.vmem %s189_s18, 256  ;;  %p290_p3 = scmp.lt.s32.totalorder %s189_s18, %s189_s18 }
  0x29   :  { %221 = vmatprep.mubr.msk.f32.mxu0 %vm54_vm0, %v43_v5  ;;  %225 = vmatprep.subr.bf16.mxu0 %v224_v3  ;;  %v201_v8 = vld [vmem:[%s397_s2] ss:$0 sm:$0xff]  ;;  %v204_v11 = vld [vmem:[%s397_s2 + $0x3] ss:$0 sm:$0xff]  ;;  %v205_v33 = vld [vmem:[%s397_s2 + $0x1] ss:$0 sm:$0xff]  ;;  %p286_p2 = scmp.ne.s32.totalorder %s189_s18, %s285_s19  ;;  %p291_p4 = scmp.lt.s32.totalorder %s285_s19, %s285_s19 }
  0x2a   :  { %227 = vmatpush3.bf16.msra.mxu0 %v224_v3  ;;  %v206_v35 = vld [vmem:[%s397_s2 + $0x2] ss:$0 sm:$0xff] }
  0x2b   :  { %229 = vmatprep.subr.bf16.mxu0 %v228_v6  ;;  %p292_p5 = por %p291_p4, %p290_p3 }
  0x2d   :  { %p293_p6 = pnand %p292_p5, %p286_p2 }
  0x2e   :  { %231 = vmatpush3.bf16.msra.mxu0 %v228_v6 }
  0x31   :  { %222 = vmatmul.mubr.msk.f32.vlgmr.msra.gmra.mrb[0].mxu0 %vm54_vm0, %v44_v7 }
 0x104   :  { %v223_v9 = vpop.f32.mrb[0].mxu0 }
 0x105   :  { %v127_v10 = vpop.f32.mrb[1].mxu0  ;;  %v133_v13 = vadd.f32 %v223_v9, %v201_v8 }
 0x106   :  { %v128_v12 = vadd.f32 %v201_v8, %v127_v10 }
 0x107   :  { %v144_v15 = vmul.f32 %v204_v11, %v133_v13 }
 0x108   :  { %v143_v14 = vmul.f32 %v204_v11, %v128_v12 }
 0x10a   :  { %145 = vadd.xlane.f32.xlu0 %v143_v14 }
 0x10e   :  { %147 = vadd.xlane.f32.xlu0 %v144_v15 }
 0x197   :  { %v146_v16 = vpop.xlane.xlu0 %145 }
 0x198   :  { %v149_v17 = vmul.f32 0.015625, %v146_v16 }
 0x19a   :  { %v151_v18 = vsub.f32 %v128_v12, %v149_v17 }
 0x19b   :  { %v148_v19 = vpop.xlane.xlu0 %147 }
 0x19c   :  { %v150_v20 = vmul.f32 0.015625, %v148_v19  ;;  %v153_v21 = vmul.f32 %v151_v18, %v151_v18 }
 0x19e   :  { %v152_v22 = vsub.f32 %v133_v13, %v150_v20  ;;  %v155_v23 = vmul.f32 %v204_v11, %v153_v21 }
 0x1a0   :  { %157 = vadd.xlane.f32.xlu1 %v155_v23  ;;  %v154_v24 = vmul.f32 %v152_v22, %v152_v22 }
 0x1a2   :  { %v156_v25 = vmul.f32 %v204_v11, %v154_v24 }
 0x1a4   :  { %159 = vadd.xlane.f32.xlu1 %v156_v25 }
 0x22d   :  { %v158_v26 = vpop.xlane.xlu1 %157 }
 0x22e   :  { %v161_v27 = vmul.f32 0.015625, %v158_v26 }
 0x230   :  { %v163_v28 = vadd.f32 1e-05, %v161_v27 }
 0x231   :  { %v160_v29 = vpop.xlane.xlu1 %159 }
 0x232   :  { %237 = vrsqrt.f32 %v163_v28  ;;  %v162_v30 = vmul.f32 0.015625, %v160_v29 }
 0x234   :  { %v164_v31 = vadd.f32 1e-05, %v162_v30 }
 0x236   :  { %239 = vrsqrt.f32 %v164_v31 }
 0x23c   :  { %v238_v32 = vpop.eup %237 }
 0x23d   :  { %v167_v34 = vmul.f32 %v238_v32, %v151_v18 }
 0x23f   :  { %v173_v36 = vmul.f32 %v205_v33, %v167_v34 }
 0x240   :  { %v240_v37 = vpop.eup %239 }
 0x241   :  { %v168_v38 = vmul.f32 %v240_v37, %v152_v22  ;;  %v179_v39 = vadd.f32 %v206_v35, %v173_v36 }
 0x243   :  { %v174_v40 = vmul.f32 %v205_v33, %v168_v38  ;;  %181 = vst [vmem:[#allocation7] sm:$0xff] %v179_v39 }
 0x245   :  { %v180_v41 = vadd.f32 %v206_v35, %v174_v40 }
 0x247   :  { %182 = vst [vmem:[#allocation7 + $0x8] sm:$0xff] %v180_v41 }
 0x248   :  { %296 = shalt.err (!%p293_p6)
}
 0x249   :  { %s297_s21 = scalar_lea.hbm %s398_s3, 256 }
 0x24a   :  { %p298_p7 = scmp.ne.s32.totalorder %s398_s3, %s297_s21  ;;  %p301_p8 = scmp.lt.u32.totalorder %s297_s21, %s398_s3 }
 0x24c   :  { %p303_p9 = pnand %p301_p8, %p298_p7 }
 0x24e   :  { %306 = shalt.err (!%p303_p9)
}
 0x24f   :  { %194 = dma.vmem_to_hbm [thread:$0]  %s189_s18, 256, %s398_s3, [#allocation4], %s314_s22, %s314_s22, %s315_s23  }
 0x250   :  { %311 = dma.done.wait [#allocation4], 256  }
 0x251   :  { %312 = vsyncadd [#allocation4], 4294967040 }
 0x252   :  { %198 = vsyncpa [#allocation3], 1 }
 0x253   :  { %199 = vsyncpa [#allocation6], 1 }
 0x254   :  { %200 = vsyncpa [#allocation4], 1 }

</bundles_post_ra>
